<compile_context>
chip_gen: v7x
topology: tpu7x:2x2x1
jax: 0.10.0
libtpu: 0.0.40
codegen_flags: <defaults>
</compile_context>

<pallas_src>
import jax
import jax.numpy as jnp
from jax.experimental import pallas as pl
from jax.experimental.pallas import tpu as pltpu


# ---------------------------------------------------------------------------
# Kernels
# ---------------------------------------------------------------------------
def _reorg_aligned_kernel(x_ref, o_ref):
    # x_ref: (1, tc, OH, OW)      -- one spatial quadrant of tc channels,
    #                                selected entirely by the BlockSpec.
    # o_ref: (1, 1, 1, tc, OH, OW) -- the matching output quadrant block.
    o_ref[0, 0, 0] = x_ref[0]


def _reorg_general_kernel(x_ref, o_ref):
    # x_ref: (1, tc, H, W) VMEM tile of one channel slab of one image.
    # o_ref: (1, 2, 2, tc, OH, OW) -- (hq, wq) quadrant axes, same channels.
    oh = o_ref.shape[-2]
    ow = o_ref.shape[-1]
    # Ref-sliced reads: only one quadrant's worth of vregs is live per store
    # (no full-block materialization -> no register spills on the vst slot).
    o_ref[0, 0, 0] = x_ref[0, :, 0:oh, 0:ow]   # top-left
    o_ref[0, 0, 1] = x_ref[0, :, 0:oh, ow:]    # top-right
    o_ref[0, 1, 0] = x_ref[0, :, oh:, 0:ow]    # bottom-left
    o_ref[0, 1, 1] = x_ref[0, :, oh:, ow:]     # bottom-right


# ---------------------------------------------------------------------------
# Tiling helpers
# ---------------------------------------------------------------------------
def _sublane_multiple(itemsize):
    if itemsize >= 4:
        return 8
    if itemsize == 2:
        return 16
    return 32


def _pad_up(a, m):
    return -(-a // m) * m


def _vmem_budget():
    """Returns (per_step_block_budget_bytes, vmem_limit_bytes), generation-aware.

    Pallas double-buffers each block, so real VMEM use is ~2x the per-step
    footprint; budgets are chosen so 2x budget still leaves headroom under
    the explicit vmem_limit we request.
    """
    try:
        cap = pltpu.get_tpu_info().vmem_capacity_bytes
    except Exception:  # pragma: no cover - conservative fallback
        cap = 128 << 20
    if cap <= (64 << 20):
        # v7x-class TensorCore: 64 MiB physical VMEM. 12 MiB/step -> 24 MiB
        # double-buffered, inside the 32 MiB scoped limit we request.
        return 12 << 20, 32 << 20
    # v5e / v6e: 128 MiB physical VMEM. 16 MiB/step -> 32 MiB double-buffered,
    # inside the 48 MiB limit we request (v5e default scoped limit is only
    # 16 MiB, so the explicit bump matters there).
    return 16 << 20, 48 << 20


def _pick_channel_tile(c, per_channel_bytes, step_budget, min_blocks=1):
    """Largest channel tile whose per-step block footprint fits the budget.

    Non-divisor tiles are allowed (grid uses cdiv; Pallas clips the edge
    block).  `min_blocks` guarantees enough channel blocks for megacore
    parallelism when the rest of the grid is small.
    """
    tc = max(1, min(c, step_budget // max(per_channel_bytes, 1)))
    n_ct = pl.cdiv(c, tc)
    if n_ct < min_blocks:
        n_ct = min(c, min_blocks)
        tc = pl.cdiv(c, n_ct)
        n_ct = pl.cdiv(c, tc)
    return tc, n_ct


# ---------------------------------------------------------------------------
# Public entry point
# ---------------------------------------------------------------------------
def reorg_layer(x, stride=2):
    # NOTE: the PyTorch reference always produces exactly 4 quadrants; the op
    # is only self-consistent for stride=2, so we keep the hard assert.
    assert stride == 2, "ReorgLayer reference semantics only consistent for stride=2"
    b, c, h, w = x.shape
    assert h % stride == 0 and w % stride == 0, "H and W must be even"
    oh, ow = h // stride, w // stride

    itemsize = jnp.dtype(x.dtype).itemsize
    sub = _sublane_multiple(itemsize)
    step_budget, vmem_limit = _vmem_budget()
    bytes_accessed = 2 * x.size * itemsize

    aligned = (ow % 128 == 0) and (oh % sub == 0)

    if aligned:
        # ----- Fast path: quadrant selection entirely in BlockSpec. --------
        # Per step only one input quadrant + one output quadrant is resident.
        per_channel = 2 * oh * ow * itemsize
        tc, n_ct = _pick_channel_tile(c, per_channel, step_budget, min_blocks=1)

        out6 = pl.pallas_call(
            _reorg_aligned_kernel,
            out_shape=jax.ShapeDtypeStruct((b, 2, 2, c, oh, ow), x.dtype),
            grid_spec=pltpu.PrefetchScalarGridSpec(
                num_scalar_prefetch=0,
                grid=(b, n_ct, 2, 2),
                in_specs=[
                    pl.BlockSpec(
                        (1, tc, oh, ow),
                        lambda bi, ci, hq, wq: (bi, ci, hq, wq),
                    ),
                ],
                out_specs=pl.BlockSpec(
                    (1, 1, 1, tc, oh, ow),
                    lambda bi, ci, hq, wq: (bi, hq, wq, ci, 0, 0),
                ),
            ),
            compiler_params=pltpu.CompilerParams(
                dimension_semantics=("parallel", "parallel", "parallel", "parallel"),
                vmem_limit_bytes=vmem_limit,
            ),
            cost_estimate=pl.CostEstimate(
                flops=0, transcendentals=0, bytes_accessed=bytes_accessed
            ),
        )(x)
    else:
        # ----- General path: full (H, W) plane in, four ref-sliced stores. -
        per_channel = (
            _pad_up(h, sub) * _pad_up(w, 128)
            + 4 * _pad_up(oh, sub) * _pad_up(ow, 128)
        ) * itemsize
        # Ensure at least ~4 grid steps so both v7x TensorCores get work.
        min_blocks = max(1, -(-4 // b))
        tc, n_ct = _pick_channel_tile(c, per_channel, step_budget, min_blocks=min_blocks)

        out6 = pl.pallas_call(
            _reorg_general_kernel,
            out_shape=jax.ShapeDtypeStruct((b, 2, 2, c, oh, ow), x.dtype),
            grid_spec=pltpu.PrefetchScalarGridSpec(
                num_scalar_prefetch=0,
                grid=(b, n_ct),
                in_specs=[
                    pl.BlockSpec((1, tc, h, w), lambda bi, ci: (bi, ci, 0, 0)),
                ],
                out_specs=pl.BlockSpec(
                    (1, 2, 2, tc, oh, ow), lambda bi, ci: (bi, 0, 0, ci, 0, 0)
                ),
            ),
            compiler_params=pltpu.CompilerParams(
                dimension_semantics=("parallel", "parallel"),
                vmem_limit_bytes=vmem_limit,
            ),
            cost_estimate=pl.CostEstimate(
                flops=0, transcendentals=0, bytes_accessed=bytes_accessed
            ),
        )(x)

    # (B, 2, 2, C, OH, OW) -> (B, 4C, OH, OW): channel order (hq, wq, c) is
    # exactly [TL, TR, BL, BR]; the reshape is contiguous (free).
    return out6.reshape(b, 4 * c, oh, ow)


# ---------------------------------------------------------------------------
# Pure-JAX reference (mirrors the PyTorch module exactly)
# ---------------------------------------------------------------------------
def _reorg_reference(x, stride=2):
    b, c, h, w = x.shape
    oh, ow = h // stride, w // stride
    f1 = x[:, :, 0:oh, 0:ow]
    f2 = x[:, :, 0:oh, ow:]
    f3 = x[:, :, oh:, 0:ow]
    f4 = x[:, :, oh:, ow:]
    return jnp.concatenate([f1, f2, f3, f4], axis=1)


if __name__ == "__main__":
    key = jax.random.PRNGKey(0)
    k1, k2 = jax.random.split(key)

    # 1) Small shape consistent with the module (exercises the general path).
    x = jax.random.normal(k1, (2, 4, 16, 16), dtype=jnp.float32)
    out = jax.block_until_ready(reorg_layer(x, stride=2))
    ref = _reorg_reference(x, stride=2)
    assert out.shape == (2, 16, 8, 8), out.shape
    assert out.dtype == x.dtype
    assert jnp.allclose(out, ref), "Pallas reorg (general path) mismatch vs reference"

    # 2) Lane-aligned shape (OW % 128 == 0) -- exercises the aligned fast path.
    xa = jax.random.normal(k2, (2, 4, 16, 256), dtype=jnp.float32)
    outa = jax.block_until_ready(reorg_layer(xa, stride=2))
    refa = _reorg_reference(xa, stride=2)
    assert outa.shape == (2, 16, 8, 128), outa.shape
    assert jnp.allclose(outa, refa), "Pallas reorg (aligned path) mismatch vs reference"

    print("KERNEL_OK")
</pallas_src>

<mosaic_0001>
module attributes {stable_mosaic.version = 11 : i64} {
  func.func @_reorg_general_kernel(%arg0: i32, %arg1: i32, %arg2: memref<1x2x16x16xf32, #tpu.memory_space<vmem>>, %arg3: memref<1x2x2x2x8x8xf32, #tpu.memory_space<vmem>>) attributes {dimension_semantics = [#tpu.dimension_semantics<parallel>, #tpu.dimension_semantics<parallel>], iteration_bounds = array<i64: 2, 2>, scalar_prefetch = 0 : i64, scratch_operands = 0 : i64, tpu.core_type = #tpu.core_type<tc>, window_params = [{transform_indices = @transform_0, window_bounds = array<i64: 1, 2, 16, 16>}, {transform_indices = @transform_1, window_bounds = array<i64: 1, 2, 2, 2, 8, 8>}]} {
    %c0 = arith.constant 0 : index
    %c0_0 = arith.constant 0 : index
    %c0_1 = arith.constant 0 : index
    %c0_2 = arith.constant 0 : index
    %0 = vector.load %arg2[%c0, %c0_0, %c0_1, %c0_2] : memref<1x2x16x16xf32, #tpu.memory_space<vmem>>, vector<1x2x8x8xf32>
    %1 = vector.shape_cast %0 : vector<1x2x8x8xf32> to vector<2x8x8xf32>
    %c0_3 = arith.constant 0 : index
    %c0_4 = arith.constant 0 : index
    %c0_5 = arith.constant 0 : index
    %c0_6 = arith.constant 0 : index
    %c0_7 = arith.constant 0 : index
    %c0_8 = arith.constant 0 : index
    %2 = vector.load %arg3[%c0_3, %c0_4, %c0_5, %c0_6, %c0_7, %c0_8] : memref<1x2x2x2x8x8xf32, #tpu.memory_space<vmem>>, vector<1x1x1x2x8x8xf32>
    %3 = vector.shape_cast %2 : vector<1x1x1x2x8x8xf32> to vector<2x8x8xf32>
    %4 = vector.shape_cast %1 : vector<2x8x8xf32> to vector<1x1x1x2x8x8xf32>
    tpu.vector_store %arg3[%c0_3, %c0_4, %c0_5, %c0_6, %c0_7, %c0_8], %4 {strides = array<i32>} : memref<1x2x2x2x8x8xf32, #tpu.memory_space<vmem>>, vector<1x1x1x2x8x8xf32>,
    %c0_9 = arith.constant 0 : index
    %c0_10 = arith.constant 0 : index
    %c0_11 = arith.constant 0 : index
    %c8 = arith.constant 8 : index
    %5 = vector.load %arg2[%c0_9, %c0_10, %c0_11, %c8] : memref<1x2x16x16xf32, #tpu.memory_space<vmem>>, vector<1x2x8x8xf32>
    %6 = vector.shape_cast %5 : vector<1x2x8x8xf32> to vector<2x8x8xf32>
    %c0_12 = arith.constant 0 : index
    %c0_13 = arith.constant 0 : index
    %c1 = arith.constant 1 : index
    %c0_14 = arith.constant 0 : index
    %c0_15 = arith.constant 0 : index
    %c0_16 = arith.constant 0 : index
    %7 = vector.load %arg3[%c0_12, %c0_13, %c1, %c0_14, %c0_15, %c0_16] : memref<1x2x2x2x8x8xf32, #tpu.memory_space<vmem>>, vector<1x1x1x2x8x8xf32>
    %8 = vector.shape_cast %7 : vector<1x1x1x2x8x8xf32> to vector<2x8x8xf32>
    %9 = vector.shape_cast %6 : vector<2x8x8xf32> to vector<1x1x1x2x8x8xf32>
    tpu.vector_store %arg3[%c0_12, %c0_13, %c1, %c0_14, %c0_15, %c0_16], %9 {strides = array<i32>} : memref<1x2x2x2x8x8xf32, #tpu.memory_space<vmem>>, vector<1x1x1x2x8x8xf32>,
    %c0_17 = arith.constant 0 : index
    %c0_18 = arith.constant 0 : index
    %c8_19 = arith.constant 8 : index
    %c0_20 = arith.constant 0 : index
    %10 = vector.load %arg2[%c0_17, %c0_18, %c8_19, %c0_20] : memref<1x2x16x16xf32, #tpu.memory_space<vmem>>, vector<1x2x8x8xf32>
    %11 = vector.shape_cast %10 : vector<1x2x8x8xf32> to vector<2x8x8xf32>
    %c0_21 = arith.constant 0 : index
    %c1_22 = arith.constant 1 : index
    %c0_23 = arith.constant 0 : index
    %c0_24 = arith.constant 0 : index
    %c0_25 = arith.constant 0 : index
    %c0_26 = arith.constant 0 : index
    %12 = vector.load %arg3[%c0_21, %c1_22, %c0_23, %c0_24, %c0_25, %c0_26] : memref<1x2x2x2x8x8xf32, #tpu.memory_space<vmem>>, vector<1x1x1x2x8x8xf32>
    %13 = vector.shape_cast %12 : vector<1x1x1x2x8x8xf32> to vector<2x8x8xf32>
    %14 = vector.shape_cast %11 : vector<2x8x8xf32> to vector<1x1x1x2x8x8xf32>
    tpu.vector_store %arg3[%c0_21, %c1_22, %c0_23, %c0_24, %c0_25, %c0_26], %14 {strides = array<i32>} : memref<1x2x2x2x8x8xf32, #tpu.memory_space<vmem>>, vector<1x1x1x2x8x8xf32>,
    %c0_27 = arith.constant 0 : index
    %c0_28 = arith.constant 0 : index
    %c8_29 = arith.constant 8 : index
    %c8_30 = arith.constant 8 : index
    %15 = vector.load %arg2[%c0_27, %c0_28, %c8_29, %c8_30] : memref<1x2x16x16xf32, #tpu.memory_space<vmem>>, vector<1x2x8x8xf32>
    %16 = vector.shape_cast %15 : vector<1x2x8x8xf32> to vector<2x8x8xf32>
    %c0_31 = arith.constant 0 : index
    %c1_32 = arith.constant 1 : index
    %c1_33 = arith.constant 1 : index
    %c0_34 = arith.constant 0 : index
    %c0_35 = arith.constant 0 : index
    %c0_36 = arith.constant 0 : index
    %17 = vector.load %arg3[%c0_31, %c1_32, %c1_33, %c0_34, %c0_35, %c0_36] : memref<1x2x2x2x8x8xf32, #tpu.memory_space<vmem>>, vector<1x1x1x2x8x8xf32>
    %18 = vector.shape_cast %17 : vector<1x1x1x2x8x8xf32> to vector<2x8x8xf32>
    %19 = vector.shape_cast %16 : vector<2x8x8xf32> to vector<1x1x1x2x8x8xf32>
    tpu.vector_store %arg3[%c0_31, %c1_32, %c1_33, %c0_34, %c0_35, %c0_36], %19 {strides = array<i32>} : memref<1x2x2x2x8x8xf32, #tpu.memory_space<vmem>>, vector<1x1x1x2x8x8xf32>,
    return
  }
  func.func @transform_0(%arg0: i32, %arg1: i32) -> (i32, i32, i32, i32) {
    %c0_i32 = arith.constant 0 : i32
    %c0_i32_0 = arith.constant 0 : i32
    %c0_i32_1 = arith.constant 0 : i32
    return %arg0, %arg1, %c0_i32, %c0_i32_0 : i32, i32, i32, i32
  }
  func.func @transform_1(%arg0: i32, %arg1: i32) -> (i32, i32, i32, i32, i32, i32) {
    %c0_i32 = arith.constant 0 : i32
    %c0_i32_0 = arith.constant 0 : i32
    %c0_i32_1 = arith.constant 0 : i32
    %c0_i32_2 = arith.constant 0 : i32
    %c0_i32_3 = arith.constant 0 : i32
    return %arg0, %c0_i32, %c0_i32_0, %arg1, %c0_i32_1, %c0_i32_2 : i32, i32, i32, i32, i32, i32
  }
}

</mosaic_0001>

<bundles_post_ra>
// kernel: tpu_custom_call.1
= control target key start
LH: loop header
LB: loop body
LE: loop exit
PB: predicated region body
PF: predicated region fallthrough
CT: control target
= control target key end

     0   :  { %6 = vsyncpa [#allocation3], 0  ;;  %s760_s0 = inlined_call_operand.hbm [shape: f32[2,4,16,16], index: 0, kind: input, shape index: {}]   ;;  %s761_s1 = inlined_call_operand.hbm [shape: f32[2,2,2,4,8,8], index: 1, kind: output, shape index: {}]  }
   0x1   :  { %8 = vsyncpa [#allocation3 + $0x1], 0 }
   0x2   :  { %9 = vsyncpa [#allocation4], 0 }
   0x3   :  { %11 = vsyncpa [#allocation4 + $0x1], 0  ;;  %s569_s6 = smov 0   ;;  %s571_s7 = smov 0  }
   0x4   :  { %s573_s8 = smov 0   ;;  %s575_s9 = smov 0  }
   0x5   :  { %s577_s10 = smov 0   ;;  %s579_s11 = smov 0  }
   0x6   :  { %s581_s12 = smov 0   ;;  %s583_s13 = smov 0  }
   0x7 LB: > { %s327_s14 = sadd.s32 4294967295, %s546_s13   ;;  %s328_s15 = sadd.s32 4294967294, %s546_s13   ;;  %s546_s13 = sphi %s583_s13, %s17_s13   ;;  %s542_s12 = sphi %s581_s12, %s776_s12   ;;  %s538_s11 = sphi %s579_s11, %s775_s11   ;;  %s534_s10 = sphi %s577_s10, %s774_s10   ;;  %s530_s9 = sphi %s575_s9, %s773_s9   ;;  %s526_s8 = sphi %s573_s8, %s772_s8   ;;  %s522_s7 = sphi %s571_s7, %s771_s7   ;;  %s518_s6 = sphi %s569_s6, %s770_s6  }
   0x8   : > { %s26_s16 = sadd.s32 1, %s538_s11  ;;  %s29_s17 = sadd.s32 1, %s542_s12 }
   0x9   : > { %p27_p0 = scmp.ge.s32.totalorder %s26_s16, 2  ;;  %s38_s18 = sadd.s32 1, %s526_s8 }
   0xa   : > { %p45_p1 = scmp.ne.s32.totalorder %s526_s8, %s522_s7  ;;  %p46_p2 = scmp.eq.s32.totalorder %s546_s13, 0 }
   0xb   : > { %s778_s16 = smov (%p27_p0, %s26_s16), 0  ;;  %s780_s17 = smov (!%p27_p0, %s29_s17), %s542_s12 }
   0xc   : > { %s34_s19 = ssub.s32 %s538_s11, %s778_s16  ;;  %p622_p3 = por %p46_p2, %p45_p1 }
   0xd   : > { %p31_p4 = scmp.ge.s32.totalorder %s780_s17, 2  ;;  %p51_p5 = scmp.ne.s32.totalorder %s522_s7, %s518_s6 }
   0xe   : > { %p52_p6 = scmp.eq.s32.totalorder %s327_s14, 0  ;;  %p77_p7 = scmp.eq.s32.totalorder %s327_s14, 3 }
   0xf   : > { %s782_s17 = smov (%p31_p4, %s780_s17), 0  ;;  %p83_p10 = scmp.eq.s32.totalorder %s328_s15, 3 }
  0x10   : > { %p630_p8 = por %p52_p6, %p51_p5  ;;  %p634_p9 = por %p77_p7, %p45_p1 }
  0x11   : > { %s33_s23 = ssub.s32 %s542_s12, %s782_s17  ;;  %p640_p12 = por %p83_p10, %p51_p5 }
  0x12   : > { %s765_s22 = scalar_select %p634_p9, 1, 0 }
  0x13   : > { %s35_s24 = sor.u32 %s34_s19, %s33_s23  ;;  %p370_p13 = scmp.lt.s32.totalorder %s546_s13, 4 }
  0x14   : > { %p36_p11 = scmp.eq.s32.totalorder %s35_s24, 0  ;;  %s103_s26 = sand.u32 1, %s526_s8  }
  0x15   : > { %s766_s25 = scalar_select %p640_p12, 1, 0 }
  0x16   : > { %s647_s27 = scalar_select %p36_p11, %s526_s8, %s38_s18  }
  0x17   : > { %s331_s28 = sshll.u32 %s103_s26, 5  ;;  %s351_s29 = sshll.u32 %s538_s11, 2 }
  0x18   : > { %s334_s30 = sshll.u32 %s542_s12, 3  ;;  %s107_s2 = scalar_lea.vmem [#allocation2], %s331_s28 }
  0x19   : > { %s117_s3 = sshll.u32 %s107_s2, 4  ;;  %s114_s4 = sadd.s32 %s351_s29, %s334_s30  ;;  %s651_s3 = int_to_ptr.vmem [resolvable:$true] %s117_s3 }
  0x1a   : > { %s335_s5 = sshll.u32 %s114_s4, 7  ;;  %p655_p0 = pnand %p370_p13, %p622_p3 }
  0x1b   : > { %s662_s18 = scalar_lea.hbm %s760_s0, %s335_s5  ;;  %s664_s23 = scalar_lea.sflag [#allocation3], %s103_s26 }
  0x1c   : > { %s446_s24 = scalar_lea.hbm %s662_s18, 512  ;;  %p448_p2 = pneg %p655_p0 }
  0x1d   : > { %p447_p1 = scmp.ne.s32.totalorder %s662_s18, %s446_s24  ;;  %s451_s29 = scalar_lea.hbm %s760_s0, 2048 }
  0x1e   : > { %p452_p5 = scmp.lt.u32.totalorder %s662_s18, %s760_s0  ;;  %p453_p6 = scmp.lt.u32.totalorder %s451_s29, %s446_s24 }
  0x1f   : > { %p449_p3 = pnand %p448_p2, %p447_p1  ;;  %p455_p10 = scmp.lt.u32.totalorder %s446_s24, %s662_s18 }
  0x20   : > { %p454_p7 = por %p453_p6, %p452_p5 }
  0x21   : > { %p450_p4 = pneg %p449_p3 }
  0x22   : > { %p456_p11 = por %p455_p10, %p454_p7 }
  0x24   : > { %p457_p13 = pnand %p456_p11, %p450_p4 }
  0x26   : > { %460 = shalt.err (!%p457_p13)
}
  0x27   : > { %s461_s26 = scalar_lea.vmem %s651_s3, 512  ;;  %s548_s4 = smov [#allocation2]  }
  0x28   : > { %p462_p1 = scmp.ne.s32.totalorder %s651_s3, %s461_s26  ;;  %s466_s5 = sshll.u32 %s548_s4, 4  ;;  %s467_s5 = int_to_ptr.vmem [resolvable:$false] %s466_s5 }
  0x29   : > { %s468_s15 = scalar_lea.vmem %s467_s5, 1024  ;;  %p469_p9 = scmp.lt.s32.totalorder %s651_s3, %s467_s5 }
  0x2a   : > { %p464_p3 = pnand %p462_p1, %p448_p2  ;;  %p470_p5 = scmp.lt.s32.totalorder %s468_s15, %s461_s26 }
  0x2c   : > { %p465_p12 = pneg %p464_p3  ;;  %p471_p6 = por %p470_p5, %p469_p9 }
  0x2e   : > { %p472_p7 = pnand %p471_p6, %p465_p12 }
  0x30   : > { %475 = shalt.err (!%p472_p7)
}
  0x31   : > { %s549_s19 = smov 128   ;;  %s550_s24 = smov 8  }
  0x32   : > { %365 = dma.hbm_to_vmem [thread:$0]  (!%p655_p0), %s662_s18, 512, %s651_s3, %s664_s23, %s549_s19, %s549_s19, %s550_s24  }
  0x33   : > { %p336_p2 = scmp.ge.s32.totalorder %s546_s13, 1  ;;  %p125_p4 = scmp.lt.s32.totalorder %s546_s13, 5 }
  0x35   : > { %p126_p10 = pnand %p336_p2, %p125_p4 }
  0x36   : > { %s695_s20 = sand.u32 (!%p126_p10), 1, %s522_s7  }
  0x37   : > { %129 = sbr.rel (%p126_p10) target bundleno = 196 (0xc4), region = 24  ;;  %s337_s28 = sshll.u32 (!%p126_p10), %s695_s20, 5 }
  0x38   : > { %s132_s29 = scalar_lea.sflag (!%p126_p10), [#allocation3], %s695_s20  ;;  %s135_s30 = scalar_lea.vmem (!%p126_p10), [#allocation2], %s337_s28 }
  0x3e   : > { %509 = dma.done.wait (%p630_p8), %s132_s29, 512  }
  0x3f   : > { %511 = vsyncadd (%p630_p8), %s132_s29, 4294966784  ;;  %s338_s3 = sshll.u32 %s695_s20, 6  ;;  %v179_v0 = vld [vmem:[%s135_s30 + $0x8] sm:$0xff]  ;;  %v161_v1 = vld [vmem:[%s135_s30] sm:$0xff]  ;;  %vm158_vm0 = vcmask 64512   ;;  %s551_s14 = smov 120  }
  0x40   : > { %v180_v2 = vld [vmem:[%s135_s30 + $0x18] sm:$0xff]  ;;  %183 = vrot.lane.b32.xlu1 %v179_v0, %s551_s14  ;;  %165 = vrot.lane.b32.xlu0 %v161_v1, %s551_s14  ;;  %v162_v3 = vld [vmem:[%s135_s30 + $0x10] sm:$0xff]  ;;  %s153_s18 = scalar_lea.vmem [#allocation5], %s338_s3  ;;  %s193_s21 = scalar_lea.sflag [#allocation4], %s695_s20 }
  0x41   : > { %159 = vst.msk [vmem:[%s153_s18] sm:$0xff] %vm158_vm0, %v161_v1  ;;  %341 = vst.msk [vmem:[%s153_s18 + $0x20] sm:$0xff] %vm158_vm0, %v179_v0 }
  0x42   : > { %342 = vst.msk [vmem:[%s153_s18 + $0x28] sm:$0xff] %vm158_vm0, %v180_v2  ;;  %160 = vst.msk [vmem:[%s153_s18 + $0x8] sm:$0xff] %vm158_vm0, %v162_v3 }
  0x44   : > { %185 = vrot.lane.b32.xlu1 %v180_v2, %s551_s14  ;;  %167 = vrot.lane.b32.xlu0 %v162_v3, %s551_s14 }
  0xb2   : > { %v184_v4 = vpop.permute.xlu1 %183  ;;  %v166_v5 = vpop.permute.xlu0 %165 }
  0xb3   : > { %343 = vst.msk [vmem:[%s153_s18 + $0x30] sm:$0xff] %vm158_vm0, %v184_v4  ;;  %339 = vst.msk [vmem:[%s153_s18 + $0x10] sm:$0xff] %vm158_vm0, %v166_v5 }
  0xb6   : > { %v186_v6 = vpop.permute.xlu1 %185  ;;  %v168_v7 = vpop.permute.xlu0 %167 }
  0xb7   : > { %344 = vst.msk [vmem:[%s153_s18 + $0x38] sm:$0xff] %vm158_vm0, %v186_v6  ;;  %340 = vst.msk [vmem:[%s153_s18 + $0x18] sm:$0xff] %vm158_vm0, %v168_v7 }
  0xb8   : > { %s346_s23 = sshll.u32 %s530_s9, 1  ;;  %s347_s2 = sshll.u32 %s534_s10, 4 }
  0xb9   : > { %s205_s26 = sadd.s32 %s347_s2, %s346_s23  ;;  %s224_s4 = sshll.u32 %s153_s18, 4  ;;  %s225_s4 = int_to_ptr.vmem [resolvable:$true] %s224_s4 }
  0xba   : > { %s348_s5 = sshll.u32 %s205_s26, 7  ;;  %s552_s20 = smov 256  }
  0xbb   : > { %s207_s24 = scalar_lea.hbm %s761_s1, %s348_s5  ;;  %p768_p8 = scmp.ne.s32.totalorder %s765_s22, 0 }
  0xbc   : > { %s553_s28 = smov 512   ;;  %s554_s29 = smov 2  }
  0xbd   : > { %354 = sst [smem:[#allocation7]] (%p768_p8), %s552_s20  ;;  %s555_s9 = smov 128  }
  0xbe   : > { %355 = sst [smem:[#allocation7 + $0x1]] (%p768_p8), %s553_s28  ;;  %s556_s10 = smov 8  }
  0xbf   : > { %356 = sst [smem:[#allocation7 + $0x2]] (%p768_p8), %s554_s29  ;;  %s557_s30 = smov [#allocation6]  }
  0xc0   : > { %357 = sst [smem:[#allocation7 + $0x3]] (%p768_p8), %s555_s9  ;;  %s558_s3 = smov 0  }
  0xc1   : > { %358 = sst [smem:[#allocation7 + $0x4]] (%p768_p8), %s555_s9 }
  0xc2   : > { %359 = sst [smem:[#allocation7 + $0x5]] (%p768_p8), %s556_s10 }
  0xc3   : > { %360 = dma.general (%p768_p8), %s225_s4, 1024, %s207_s24, %s193_s21, %s557_s30, [#allocation7], %s558_s3, 0  }
  0xc4 PF: > { %p371_p9 = scmp.ge.s32.totalorder %s546_s13, 2  ;;  %s252_s14 = sand.u32 1, %s518_s6  }
  0xc5   : > { %p769_p12 = scmp.ne.s32.totalorder %s766_s25, 0  ;;  %s253_s18 = scalar_lea.sflag [#allocation4], %s252_s14 }
  0xc7   : > { %p367_p0 = pnand %p371_p9, %p769_p12 }
  0xc9   : > { %513 = dma.done.wait (!%p367_p0), %s253_s18, 1024  }
  0xca   : > { %515 = vsyncadd (!%p367_p0), %s253_s18, 4294966272  ;;  %s17_s13 = sadd.s32 1, %s546_s13   ;;  %s770_s6 = smov %s522_s7 }
  0xcb   : > { %p14_p11 = scmp.ge.s32.totalorder %s17_s13, 6   ;;  %s771_s7 = smov %s526_s8 }
  0xcc   : > { %s772_s8 = smov %s647_s27  ;;  %s773_s9 = smov %s538_s11 }
  0xcd   : > { %s774_s10 = smov %s542_s12  ;;  %s775_s11 = smov %s778_s16 }
  0xce   : > { %s776_s12 = smov %s782_s17  ;;  %16 = sbr.rel (!%p14_p11) target bundleno = 7 (0x7), region = 77 }
  0xd5   :  { %258 = vsyncpa [#allocation3], 1 }
  0xd6   :  { %260 = vsyncpa [#allocation3 + $0x1], 1 }
  0xd7   :  { %261 = vsyncpa [#allocation4], 1 }
  0xd8   :  { %263 = vsyncpa [#allocation4 + $0x1], 1 }

</bundles_post_ra>
